<compile_context>
chip_gen: v7x
topology: tpu7x:2x2x1
jax: 0.10.0
libtpu: 0.0.40
codegen_flags: <defaults>
</compile_context>

<pallas_src>
import jax
import jax.numpy as jnp
from jax.experimental import pallas as pl
from jax.experimental.pallas import tpu as pltpu


_LANE = 128
_TARGET_IN_BLOCK_BYTES = 4 << 20     # ~4 MiB input block per grid step
_VMEM_LIMIT_BYTES = 32 << 20         # in(1x) + out(2x), double-buffered ~24 MiB


def _sublane_pack(dtype) -> int:
    itemsize = jnp.dtype(dtype).itemsize
    if itemsize >= 4:
        return 8
    if itemsize == 2:
        return 16
    return 32  # int8 / fp8


def _round_up(a: int, m: int) -> int:
    return -(-a // m) * m


def _pick_tiles(rows: int, cols: int, itemsize: int, sub: int):
    """Pick (tr, tc) block sizes for a (rows, cols) slab."""
    # Column tile: keep the full column extent whenever a (sub, cols) block
    # fits the byte budget; otherwise a lane-aligned slice of it.
    if cols <= _LANE or cols * itemsize * sub <= _TARGET_IN_BLOCK_BYTES:
        tc = cols
    else:
        tc = max(_LANE,
                 (_TARGET_IN_BLOCK_BYTES // (sub * itemsize)) // _LANE * _LANE)

    # Row tile: as many rows as fit the byte budget ...
    max_tr = max(sub,
                 (_TARGET_IN_BLOCK_BYTES // max(1, tc * itemsize)) // sub * sub)
    if rows <= sub:
        tr = rows                       # full extent (allowed even when < 8)
    elif rows <= max_tr:
        # ... but split small/medium inputs into 2-4 balanced tiles so the
        # "parallel" grid axis can be sharded across both v7x TensorCores.
        ntiles = 4 if rows >= 4 * sub else 2
        tr = min(_round_up(-(-rows // ntiles), sub), rows)
    else:
        tr = max_tr
    return tr, tc


def _dup_kernel(x_ref, o_ref):
    # x_ref: (TR, TC) input tile.  o_ref: (2, TR, TC) output tile.
    # Single VMEM-resident read, two writes: the minimum traffic for this op.
    v = x_ref[...]
    o_ref[0] = v
    o_ref[1] = v


def _duplicate_pallas(x: jnp.ndarray) -> jnp.ndarray:
    """Returns stack([x, x], axis=0) computed by a tiled Pallas copy kernel."""
    orig_shape = x.shape
    total = 1
    for s in orig_shape:
        total *= s
    if total == 0:
        # Degenerate empty input: nothing to copy.
        return jnp.stack([x, x], axis=0)

    # Exact-sized 2-D view of the input: no padding, no output slicing.
    if total % _LANE == 0:
        rows, cols = total // _LANE, _LANE            # lane-dense slab
    elif x.ndim >= 2:
        rows, cols = total // orig_shape[-1], orig_shape[-1]
    else:
        rows, cols = 1, total                         # 0-d / 1-d ragged input
    x2d = x.reshape(rows, cols)

    itemsize = jnp.dtype(x.dtype).itemsize
    sub = _sublane_pack(x.dtype)
    tr, tc = _pick_tiles(rows, cols, itemsize, sub)

    cost = pl.CostEstimate(
        flops=0,
        transcendentals=0,
        bytes_accessed=3 * rows * cols * itemsize,    # 1 read + 2 writes
    )

    out2d = pl.pallas_call(
        _dup_kernel,
        out_shape=jax.ShapeDtypeStruct((2, rows, cols), x.dtype),
        grid=(pl.cdiv(rows, tr), pl.cdiv(cols, tc)),
        in_specs=[pl.BlockSpec((tr, tc), lambda i, j: (i, j))],
        out_specs=pl.BlockSpec((2, tr, tc), lambda i, j: (0, i, j)),
        compiler_params=pltpu.CompilerParams(
            dimension_semantics=("parallel", "parallel"),
            vmem_limit_bytes=_VMEM_LIMIT_BYTES,
        ),
        cost_estimate=cost,
    )(x2d)

    # Contiguous row-major reshape: metadata-only, no extra HBM pass.
    return out2d.reshape((2,) + orig_shape)


@jax.custom_vjp
def grad_balanced_duplicate(x, factor1, factor2):
    del factor1, factor2  # backward-only parameters
    return _duplicate_pallas(x)


def _gbd_fwd(x, factor1, factor2):
    return _duplicate_pallas(x), (factor1, factor2)


def _gbd_bwd(res, g):
    factor1, factor2 = res
    # Elementwise combine of the two incoming gradient paths; plain jnp fuses
    # fine here, no dedicated kernel needed.
    gx = (g[0] * factor1 + g[1] * factor2).astype(g.dtype)
    return gx, jnp.zeros_like(factor1), jnp.zeros_like(factor2)


grad_balanced_duplicate.defvjp(_gbd_fwd, _gbd_bwd)


class GradBalancer2Out:
    """JAX/Pallas equivalent of Grad_Balancer_2out.

    Forward duplicates x along a new leading axis of size 2 (Pallas kernel).
    Backward combines the two incoming gradient paths as
    g[0]*factor1 + g[1]*factor2 (custom_vjp).

    NOTE: when the duplicate does not need to be materialized (downstream ops
    can consume a broadcast view), jnp.broadcast_to(x[None], (2,)+x.shape) is
    cheaper (zero HBM traffic); this class keeps the materializing Pallas
    kernel to match the PyTorch module's contiguous stacked output.
    """

    def __init__(self, factor1: float, factor2: float):
        if factor1 <= 0.0:
            raise Exception("Param:factor1 must > 0.")
        if factor2 <= 0.0:
            raise Exception("Param:factor2 must > 0.")
        self.factor_for_path_1 = jnp.asarray(factor1, dtype=jnp.float32)
        self.factor_for_path_2 = jnp.asarray(factor2, dtype=jnp.float32)
        # TODO(synk): the PyTorch training-time `x.requires_grad` guard has no
        # JAX equivalent and is intentionally omitted.

    def __call__(self, x: jnp.ndarray) -> jnp.ndarray:
        return grad_balanced_duplicate(
            x, self.factor_for_path_1, self.factor_for_path_2)


if __name__ == "__main__":
    key = jax.random.PRNGKey(0)
    module = GradBalancer2Out(factor1=1.0, factor2=0.5)

    # batch=2, channels=4, 16x16 -> 2048 elements (128-divisible, lane-dense path).
    x = jax.random.normal(key, (2, 4, 16, 16), dtype=jnp.float32)
    out = jax.block_until_ready(module(x))
    ref = jnp.stack([x, x], axis=0)
    assert out.shape == (2, 2, 4, 16, 16), out.shape
    assert out.dtype == x.dtype
    assert bool(jnp.array_equal(out, ref))

    # Non-128-divisible element count: ragged-block path (no pad / no slice).
    x2 = jax.random.normal(jax.random.PRNGKey(1), (3, 5, 7), dtype=jnp.float32)
    out2 = jax.block_until_ready(module(x2))
    assert out2.shape == (2, 3, 5, 7), out2.shape
    assert bool(jnp.array_equal(out2, jnp.stack([x2, x2], axis=0)))

    # bf16 path (different sublane pack).
    x3 = jax.random.normal(jax.random.PRNGKey(2), (4, 8, 32), dtype=jnp.bfloat16)
    out3 = jax.block_until_ready(module(x3))
    assert out3.shape == (2, 4, 8, 32), out3.shape
    assert bool(jnp.array_equal(out3, jnp.stack([x3, x3], axis=0)))

    # Gradient balancing: d/dx [2*sum(y[0]) + 3*sum(y[1])] = 2*f1 + 3*f2 = 3.5.
    def loss(xx):
        y = module(xx)
        return 2.0 * jnp.sum(y[0]) + 3.0 * jnp.sum(y[1])

    g = jax.block_until_ready(jax.grad(loss)(x))
    assert bool(jnp.allclose(g, 3.5 * jnp.ones_like(x)))

    print("KERNEL_OK")
</pallas_src>

<mosaic_0001>
module attributes {stable_mosaic.version = 11 : i64} {
  func.func @_dup_kernel(%arg0: i32, %arg1: i32, %arg2: memref<8x128xf32, #tpu.memory_space<vmem>>, %arg3: memref<2x8x128xf32, #tpu.memory_space<vmem>>) attributes {dimension_semantics = [#tpu.dimension_semantics<parallel>, #tpu.dimension_semantics<parallel>], iteration_bounds = array<i64: 2, 1>, scalar_prefetch = 0 : i64, scratch_operands = 0 : i64, tpu.core_type = #tpu.core_type<tc>, window_params = [{transform_indices = @transform_0, window_bounds = array<i64: 8, 128>}, {transform_indices = @transform_1, window_bounds = array<i64: 2, 8, 128>}]} {
    %c0 = arith.constant 0 : index
    %c0_0 = arith.constant 0 : index
    %0 = vector.load %arg2[%c0, %c0_0] : memref<8x128xf32, #tpu.memory_space<vmem>>, vector<8x128xf32>
    %c0_1 = arith.constant 0 : index
    %c0_2 = arith.constant 0 : index
    %c0_3 = arith.constant 0 : index
    %1 = vector.load %arg3[%c0_1, %c0_2, %c0_3] : memref<2x8x128xf32, #tpu.memory_space<vmem>>, vector<1x8x128xf32>
    %2 = vector.shape_cast %1 : vector<1x8x128xf32> to vector<8x128xf32>
    %3 = vector.shape_cast %0 : vector<8x128xf32> to vector<1x8x128xf32>
    tpu.vector_store %arg3[%c0_1, %c0_2, %c0_3], %3 {strides = array<i32>} : memref<2x8x128xf32, #tpu.memory_space<vmem>>, vector<1x8x128xf32>,
    %c1 = arith.constant 1 : index
    %c0_4 = arith.constant 0 : index
    %c0_5 = arith.constant 0 : index
    %4 = vector.load %arg3[%c1, %c0_4, %c0_5] : memref<2x8x128xf32, #tpu.memory_space<vmem>>, vector<1x8x128xf32>
    %5 = vector.shape_cast %4 : vector<1x8x128xf32> to vector<8x128xf32>
    %6 = vector.shape_cast %0 : vector<8x128xf32> to vector<1x8x128xf32>
    tpu.vector_store %arg3[%c1, %c0_4, %c0_5], %6 {strides = array<i32>} : memref<2x8x128xf32, #tpu.memory_space<vmem>>, vector<1x8x128xf32>,
    return
  }
  func.func @transform_0(%arg0: i32, %arg1: i32) -> (i32, i32) {
    %c0_i32 = arith.constant 0 : i32
    return %arg0, %arg1 : i32, i32
  }
  func.func @transform_1(%arg0: i32, %arg1: i32) -> (i32, i32, i32) {
    %c0_i32 = arith.constant 0 : i32
    %c0_i32_0 = arith.constant 0 : i32
    return %c0_i32, %arg0, %arg1 : i32, i32, i32
  }
}

</mosaic_0001>

<bundles_post_ra>
// kernel: tpu_custom_call.1
= control target key start
LH: loop header
LB: loop body
LE: loop exit
PB: predicated region body
PF: predicated region fallthrough
CT: control target
= control target key end

     0   :  { %6 = vsyncpa [#allocation3], 0  ;;  %s633_s0 = inlined_call_operand.hbm [shape: f32[16,128], index: 0, kind: input, shape index: {}]   ;;  %s634_s1 = inlined_call_operand.hbm [shape: f32[2,16,128], index: 1, kind: output, shape index: {}]  }
   0x1   :  { %8 = vsyncpa [#allocation3 + $0x1], 0 }
   0x2   :  { %9 = vsyncpa [#allocation4], 0 }
   0x3   :  { %11 = vsyncpa [#allocation4 + $0x1], 0  ;;  %s458_s6 = smov 0   ;;  %s460_s7 = smov 0  }
   0x4   :  { %s462_s8 = smov 0   ;;  %s464_s9 = smov 0  }
   0x5   :  { %s466_s10 = smov 0   ;;  %s468_s11 = smov 0  }
   0x6 LB: > { %s250_s12 = sadd.s32 4294967295, %s441_s11   ;;  %s251_s13 = sadd.s32 4294967294, %s441_s11   ;;  %s441_s11 = sphi %s468_s11, %s17_s11   ;;  %s437_s10 = sphi %s466_s10, %s650_s10   ;;  %s433_s9 = sphi %s464_s9, %s649_s9   ;;  %s429_s8 = sphi %s462_s8, %s648_s8   ;;  %s425_s7 = sphi %s460_s7, %s647_s7   ;;  %s421_s6 = sphi %s458_s6, %s646_s6  }
   0x7   : > { %s29_s14 = sadd.s32 1, %s437_s10  ;;  %s38_s15 = sadd.s32 1, %s429_s8 }
   0x8   : > { %p31_p0 = scmp.ge.s32.totalorder %s29_s14, 2  ;;  %p45_p1 = scmp.ne.s32.totalorder %s429_s8, %s425_s7 }
   0x9   : > { %p46_p2 = scmp.eq.s32.totalorder %s441_s11, 0  ;;  %p51_p3 = scmp.ne.s32.totalorder %s425_s7, %s421_s6 }
   0xa   : > { %s652_s14 = smov (%p31_p0, %s29_s14), 0  ;;  %p52_p5 = scmp.eq.s32.totalorder %s250_s12, 0 }
   0xb   : > { %p499_p4 = por %p46_p2, %p45_p1  ;;  %s33_s17 = ssub.s32 %s437_s10, %s652_s14 }
   0xc   : > { %p77_p6 = scmp.eq.s32.totalorder %s250_s12, 1  ;;  %p36_p7 = scmp.eq.s32.totalorder %s33_s17, 0 }
   0xd   : > { %p505_p8 = por %p52_p5, %p51_p3  ;;  %p83_p10 = scmp.eq.s32.totalorder %s251_s13, 1 }
   0xe   : > { %p509_p9 = por %p77_p6, %p45_p1  ;;  %p276_p13 = scmp.lt.s32.totalorder %s441_s11, 2 }
   0xf   : > { %s514_s20 = scalar_select %p36_p7, %s429_s8, %s38_s15  }
  0x10   : > { %s638_s19 = scalar_select %p509_p9, 1, 0 }
  0x11   : > { %p516_p11 = por %p83_p10, %p51_p3  ;;  %s103_s22 = sand.u32 1, %s429_s8  }
  0x12   : > { %s254_s23 = sshll.u32 %s103_s22, 3  ;;  %s255_s24 = sshll.u32 %s437_s10, 7 }
  0x13   : > { %s639_s21 = scalar_select %p516_p11, 1, 0 }
  0x14   : > { %s527_s27 = scalar_lea.hbm %s633_s0, %s255_s24  ;;  %s107_s28 = scalar_lea.vmem [#allocation2], %s254_s23 }
  0x15   : > { %s115_s29 = sshll.u32 %s107_s28, 4  ;;  %p533_p0 = pnand %p276_p13, %p499_p4  ;;  %s529_s29 = int_to_ptr.vmem [resolvable:$true] %s115_s29 }
  0x16   : > { %s104_s2 = scalar_lea.sflag [#allocation3], %s103_s22  ;;  %s329_s3 = scalar_lea.hbm %s527_s27, 128 }
  0x17   : > { %p330_p3 = scmp.ne.s32.totalorder %s527_s27, %s329_s3  ;;  %p331_p5 = pneg %p533_p0 }
  0x18   : > { %s334_s12 = scalar_lea.hbm %s633_s0, 256  ;;  %p335_p4 = scmp.lt.u32.totalorder %s527_s27, %s633_s0 }
  0x19   : > { %p332_p6 = pnand %p331_p5, %p330_p3  ;;  %p336_p10 = scmp.lt.u32.totalorder %s334_s12, %s329_s3 }
  0x1a   : > { %p338_p12 = scmp.lt.u32.totalorder %s329_s3, %s527_s27 }
  0x1b   : > { %p333_p7 = pneg %p332_p6  ;;  %p337_p13 = por %p336_p10, %p335_p4 }
  0x1d   : > { %p339_p1 = por %p338_p12, %p337_p13 }
  0x1f   : > { %p340_p2 = pnand %p339_p1, %p333_p7 }
  0x21   : > { %343 = shalt.err (!%p340_p2)
}
  0x22   : > { %s344_s16 = scalar_lea.vmem %s529_s29, 128  ;;  %s443_s17 = smov [#allocation2]  }
  0x23   : > { %p345_p3 = scmp.ne.s32.totalorder %s529_s29, %s344_s16  ;;  %s349_s22 = sshll.u32 %s443_s17, 4  ;;  %s350_s22 = int_to_ptr.vmem [resolvable:$false] %s349_s22 }
  0x24   : > { %s351_s23 = scalar_lea.vmem %s350_s22, 256  ;;  %p352_p9 = scmp.lt.s32.totalorder %s529_s29, %s350_s22 }
  0x25   : > { %p347_p6 = pnand %p345_p3, %p331_p5  ;;  %p353_p4 = scmp.lt.s32.totalorder %s351_s23, %s344_s16 }
  0x27   : > { %p348_p11 = pneg %p347_p6  ;;  %p354_p10 = por %p353_p4, %p352_p9 }
  0x29   : > { %p355_p12 = pnand %p354_p10, %p348_p11 }
  0x2b   : > { %358 = shalt.err (!%p355_p12)
}
  0x2c   : > { %271 = dma.hbm_to_vmem [thread:$0]  (!%p533_p0), %s527_s27, 128, %s529_s29, %s104_s2  }
  0x2d   : > { %p641_p1 = scmp.lt.s32.totalorder %s441_s11, 3  ;;  %p642_p2 = scmp.ge.s32.totalorder %s441_s11, 1 }
  0x2f   : > { %p121_p5 = pnand %p642_p2, %p641_p1 }
  0x30   : > { %s569_s24 = sand.u32 (!%p121_p5), 1, %s425_s7  }
  0x31   : > { %124 = sbr.rel (%p121_p5) target bundleno = 85 (0x55), region = 24  ;;  %s257_s25 = sshll.u32 (!%p121_p5), %s569_s24, 3 }
  0x32   : > { %s127_s26 = scalar_lea.sflag (!%p121_p5), [#allocation3], %s569_s24  ;;  %s130_s28 = scalar_lea.vmem (!%p121_p5), [#allocation2], %s257_s25 }
  0x38   : > { %412 = dma.done.wait (%p505_p8), %s127_s26, 128  }
  0x39   : > { %414 = vsyncadd (%p505_p8), %s127_s26, 4294967168  ;;  %s258_s27 = sshll.u32 %s569_s24, 4  ;;  %s261_s29 = sshll.u32 %s433_s9, 7  ;;  %v149_v0 = vld [vmem:[%s130_s28] sm:$0xff] }
  0x3a   : > { %s148_s30 = scalar_lea.vmem [#allocation5], %s258_s27  ;;  %s582_s5 = scalar_lea.hbm %s634_s1, %s261_s29 }
  0x3b   : > { %s167_s2 = sshll.u32 %s148_s30, 4  ;;  %150 = vst [vmem:[%s148_s30] sm:$0xff] %v149_v0  ;;  %259 = vst [vmem:[%s148_s30 + $0x8] sm:$0xff] %v149_v0  ;;  %s154_s18 = scalar_lea.sflag [#allocation4], %s569_s24  ;;  %s584_s2 = int_to_ptr.vmem [resolvable:$true] %s167_s2 }
  0x3c   : > { %s359_s12 = scalar_lea.vmem %s584_s2, 256  ;;  %p643_p9 = scmp.ne.s32.totalorder %s638_s19, 0 }
  0x3d   : > { %p360_p8 = scmp.ne.s32.totalorder %s584_s2, %s359_s12  ;;  %s444_s9 = smov [#allocation5]  }
  0x3e   : > { %s363_s13 = sshll.u32 %s444_s9, 4  ;;  %s364_s13 = int_to_ptr.vmem [resolvable:$false] %s363_s13 }
  0x3f   : > { %p361_p11 = pnand %p360_p8, %p643_p9  ;;  %s365_s15 = scalar_lea.vmem %s364_s13, 512 }
  0x40   : > { %p366_p7 = scmp.lt.s32.totalorder %s584_s2, %s364_s13  ;;  %p367_p13 = scmp.lt.s32.totalorder %s365_s15, %s359_s12 }
  0x41   : > { %p362_p0 = pneg %p361_p11 }
  0x42   : > { %p368_p3 = por %p367_p13, %p366_p7 }
  0x44   : > { %p369_p6 = pnand %p368_p3, %p362_p0 }
  0x46   : > { %372 = shalt.err (!%p369_p6)
}
  0x47   : > { %s373_s16 = scalar_lea.hbm %s582_s5, 256  ;;  %s377_s23 = scalar_lea.hbm %s634_s1, 512 }
  0x48   : > { %p374_p4 = scmp.ne.s32.totalorder %s582_s5, %s373_s16  ;;  %p378_p1 = scmp.lt.u32.totalorder %s582_s5, %s634_s1 }
  0x49   : > { %p379_p2 = scmp.lt.u32.totalorder %s377_s23, %s373_s16  ;;  %p381_p8 = scmp.lt.u32.totalorder %s373_s16, %s582_s5 }
  0x4a   : > { %p375_p10 = pnand %p374_p4, %p643_p9 }
  0x4b   : > { %p380_p5 = por %p379_p2, %p378_p1 }
  0x4c   : > { %p376_p12 = pneg %p375_p10 }
  0x4d   : > { %p382_p11 = por %p381_p8, %p380_p5 }
  0x4f   : > { %p383_p0 = pnand %p382_p11, %p376_p12 }
  0x51   : > { %386 = shalt.err (!%p383_p0)
}
  0x52   : > { %s445_s28 = smov 128   ;;  %s446_s27 = smov 256  }
  0x53   : > { %s447_s29 = smov 8  }
  0x54   : > { %266 = dma.vmem_to_hbm [thread:$0]  (%p643_p9), %s584_s2, 256, %s582_s5, %s154_s18, %s445_s28, %s446_s27, %s447_s29  }
  0x55 PF: > { %s182_s30 = sand.u32 1, %s421_s6   ;;  %p644_p7 = scmp.ne.s32.totalorder %s639_s21, 0 }
  0x56   : > { %p645_p13 = scmp.ge.s32.totalorder %s441_s11, 2  ;;  %s183_s3 = scalar_lea.sflag [#allocation4], %s182_s30 }
  0x58   : > { %p273_p3 = pnand %p645_p13, %p644_p7 }
  0x5a   : > { %416 = dma.done.wait (!%p273_p3), %s183_s3, 256  }
  0x5b   : > { %418 = vsyncadd (!%p273_p3), %s183_s3, 4294967040  ;;  %s17_s11 = sadd.s32 1, %s441_s11   ;;  %s646_s6 = smov %s425_s7 }
  0x5c   : > { %p14_p6 = scmp.ge.s32.totalorder %s17_s11, 4   ;;  %s647_s7 = smov %s429_s8 }
  0x5d   : > { %s648_s8 = smov %s514_s20  ;;  %s649_s9 = smov %s437_s10 }
  0x5e   : > { %s650_s10 = smov %s652_s14  ;;  %16 = sbr.rel (!%p14_p6) target bundleno = 6 (0x6), region = 70 }
  0x65   :  { %188 = vsyncpa [#allocation3], 1 }
  0x66   :  { %190 = vsyncpa [#allocation3 + $0x1], 1 }
  0x67   :  { %191 = vsyncpa [#allocation4], 1 }
  0x68   :  { %193 = vsyncpa [#allocation4 + $0x1], 1 }

</bundles_post_ra>
